<compile_context>
chip_gen: v6e
topology: v6e:2x2x1
jax: 0.10.0
libtpu: 0.0.40
codegen_flags: <defaults>
</compile_context>

<pallas_src>
import functools

import jax
import jax.numpy as jnp
from jax.experimental import pallas as pl
from jax.experimental.pallas import tpu as pltpu

LANE = 128


def _round_up(x, m):
    return (x + m - 1) // m * m


def _pad2d(a, rows, cols):
    return jnp.pad(a, ((0, rows - a.shape[0]), (0, cols - a.shape[1])))


def _pick_tiling(n, tile, single_tile_cap):
    """Pick (tile_size, padded_n). Small graphs -> one tile, no tile-size padding."""
    n128 = _round_up(max(n, 1), LANE)
    if n128 <= single_tile_cap:
        return n128, n128
    return tile, _round_up(n, tile)


# ---------------------------------------------------------------------------
# Kernel 1: layer-1 aggregation + fused rel/root transform; also emits the
#           (reassociated, head-folded) layer-2 operands g2 and r2:
#   g2 = bf16( h1 @ (W2_rel @ Wl) )      (aggregated by kernel 2)
#   r2 = h1 @ (W2_root @ Wl) + (b2 @ Wl + bl)
# ---------------------------------------------------------------------------
def _layer1_kernel(x_dst_ref, x_src_ref, a_ref, w1_ref, b1_ref,
                   w2g_ref, w2r_ref, b2_ref,
                   g2_ref, r2_ref, acc_ref):
    k = pl.program_id(1)

    @pl.when(k == 0)
    def _():
        acc_ref[...] = jnp.zeros_like(acc_ref)

    # Accumulate neighbor sum:  acc += A[i-tile, k-tile] @ X[k-tile]
    acc_ref[...] += jnp.dot(a_ref[...], x_src_ref[...],
                            preferred_element_type=jnp.float32)

    @pl.when(k == pl.num_programs(1) - 1)
    def _():
        agg = acc_ref[...].astype(jnp.bfloat16)                    # [TM, Fin_p]
        fused = jnp.concatenate([agg, x_dst_ref[...]], axis=-1)    # [TM, 2*Fin_p]
        h1 = jnp.dot(fused, w1_ref[...],
                     preferred_element_type=jnp.float32) + b1_ref[...]
        h1b = h1.astype(jnp.bfloat16)
        g2_ref[...] = jnp.dot(h1b, w2g_ref[...],
                              preferred_element_type=jnp.float32).astype(jnp.bfloat16)
        r2_ref[...] = jnp.dot(h1b, w2r_ref[...],
                              preferred_element_type=jnp.float32) + b2_ref[...]


# ---------------------------------------------------------------------------
# Kernel 2: layer-2 aggregation of g2 plus the residual/root term r2.
#   out = A @ g2 + r2
# ---------------------------------------------------------------------------
def _layer2_kernel(a_ref, g_src_ref, r2_ref, out_ref, acc_ref):
    k = pl.program_id(1)

    @pl.when(k == 0)
    def _():
        acc_ref[...] = jnp.zeros_like(acc_ref)

    acc_ref[...] += jnp.dot(a_ref[...], g_src_ref[...],
                            preferred_element_type=jnp.float32)

    @pl.when(k == pl.num_programs(1) - 1)
    def _():
        out_ref[...] = acc_ref[...] + r2_ref[...]


# ---------------------------------------------------------------------------
# Wrapper
# ---------------------------------------------------------------------------
@functools.partial(jax.jit, static_argnames=("tile", "single_tile_cap"))
def kgnn_forward(x, edge_index, params, *, tile=512, single_tile_cap=1024):
    """KGNN forward. x: [N, Fin] f32, edge_index: [2, E] int (row0=src, row1=dst)."""
    w1_rel, w1_root, b1, w2_rel, w2_root, b2, wl, bl = params
    n, fin = x.shape
    fh = w1_rel.shape[1]
    c = wl.shape[1]

    # Fold the Linear head into GraphConv-2 (all-linear => exact) and
    # pre-reassociate the layer-2 aggregation.
    w2g = w2_rel @ wl                      # [fh, c]
    w2r = w2_root @ wl                     # [fh, c]
    b2e = b2 @ wl + bl                     # [1, c]

    fin_p = _round_up(fin, LANE)
    fh_p = _round_up(fh, LANE)
    fo_p = _round_up(c, LANE)
    t, n_pad = _pick_tiling(n, tile, single_tile_cap)
    gi = n_pad // t
    gk = n_pad // t

    # Dense adjacency A[dst, src] (multiplicities are small ints -> exact in bf16).
    src = edge_index[0].astype(jnp.int32)
    dst = edge_index[1].astype(jnp.int32)
    adj = (jnp.zeros((n_pad, n_pad), jnp.float32)
           .at[dst, src].add(1.0)
           .astype(jnp.bfloat16))

    x_p = _pad2d(x, n_pad, fin_p).astype(jnp.bfloat16)

    # Fused & padded weights (bf16 operands, f32 biases).
    w1_fused = jnp.concatenate(
        [_pad2d(w1_rel, fin_p, fh_p), _pad2d(w1_root, fin_p, fh_p)],
        axis=0).astype(jnp.bfloat16)                               # [2*fin_p, fh_p]
    b1_p = _pad2d(b1, 1, fh_p).astype(jnp.float32)
    w2g_p = _pad2d(w2g, fh_p, fo_p).astype(jnp.bfloat16)
    w2r_p = _pad2d(w2r, fh_p, fo_p).astype(jnp.bfloat16)
    b2_p = _pad2d(b2e, 1, fo_p).astype(jnp.float32)

    const = lambda i, k: (0, 0)
    row = lambda i, k: (i, 0)
    col = lambda i, k: (k, 0)
    tilemap = lambda i, k: (i, k)

    cparams = pltpu.CompilerParams(
        dimension_semantics=("parallel", "arbitrary"),
        vmem_limit_bytes=32 * 1024 * 1024)

    # ------------------------- pass 1: layer 1 -------------------------------
    cost1 = pl.CostEstimate(
        flops=2 * n_pad * n_pad * fin_p
        + 2 * n_pad * (2 * fin_p) * fh_p
        + 2 * 2 * n_pad * fh_p * fo_p,
        transcendentals=0,
        bytes_accessed=2 * n_pad * n_pad + 2 * (gi + 1) * n_pad * fin_p
        + 6 * n_pad * fo_p)

    g2, r2 = pl.pallas_call(
        _layer1_kernel,
        out_shape=(jax.ShapeDtypeStruct((n_pad, fo_p), jnp.bfloat16),
                   jax.ShapeDtypeStruct((n_pad, fo_p), jnp.float32)),
        grid_spec=pltpu.PrefetchScalarGridSpec(
            num_scalar_prefetch=0,
            grid=(gi, gk),
            in_specs=[
                pl.BlockSpec((t, fin_p), row),           # x (dst rows, root term)
                pl.BlockSpec((t, fin_p), col),           # x (src slices, pipelined)
                pl.BlockSpec((t, t), tilemap),           # A tile
                pl.BlockSpec((2 * fin_p, fh_p), const),  # [W1_rel; W1_root]
                pl.BlockSpec((1, fh_p), const),          # b1
                pl.BlockSpec((fh_p, fo_p), const),       # W2_rel @ Wl
                pl.BlockSpec((fh_p, fo_p), const),       # W2_root @ Wl
                pl.BlockSpec((1, fo_p), const),          # b2 @ Wl + bl
            ],
            out_specs=(pl.BlockSpec((t, fo_p), row),
                       pl.BlockSpec((t, fo_p), row)),
            scratch_shapes=[pltpu.VMEM((t, fin_p), jnp.float32)],
        ),
        compiler_params=cparams,
        cost_estimate=cost1,
    )(x_p, x_p, adj, w1_fused, b1_p, w2g_p, w2r_p, b2_p)

    # ------------------- pass 2: layer 2 (+ folded head) ---------------------
    cost2 = pl.CostEstimate(
        flops=2 * n_pad * n_pad * fo_p,
        transcendentals=0,
        bytes_accessed=2 * n_pad * n_pad + 2 * (gi + 2) * n_pad * fo_p
        + 4 * n_pad * fo_p)

    out_pad = pl.pallas_call(
        _layer2_kernel,
        out_shape=jax.ShapeDtypeStruct((n_pad, fo_p), jnp.float32),
        grid_spec=pltpu.PrefetchScalarGridSpec(
            num_scalar_prefetch=0,
            grid=(gi, gk),
            in_specs=[
                pl.BlockSpec((t, t), tilemap),           # A tile
                pl.BlockSpec((t, fo_p), col),            # g2 (src slices, pipelined)
                pl.BlockSpec((t, fo_p), row),            # r2 (dst rows)
            ],
            out_specs=pl.BlockSpec((t, fo_p), row),
            scratch_shapes=[pltpu.VMEM((t, fo_p), jnp.float32)],
        ),
        compiler_params=cparams,
        cost_estimate=cost2,
    )(adj, g2, r2)

    return out_pad[:n, :c]


# ---------------------------------------------------------------------------
# Parameters & references
# ---------------------------------------------------------------------------
def init_params(key, in_channels, hidden_channels, out_channels, num_classes):
    ks = jax.random.split(key, 8)
    s = 0.1
    # Weights stored pre-transposed to [in, out]; biases [1, out].
    w1_rel = s * jax.random.normal(ks[0], (in_channels, hidden_channels), jnp.float32)
    w1_root = s * jax.random.normal(ks[1], (in_channels, hidden_channels), jnp.float32)
    b1 = s * jax.random.normal(ks[2], (1, hidden_channels), jnp.float32)
    w2_rel = s * jax.random.normal(ks[3], (hidden_channels, out_channels), jnp.float32)
    w2_root = s * jax.random.normal(ks[4], (hidden_channels, out_channels), jnp.float32)
    b2 = s * jax.random.normal(ks[5], (1, out_channels), jnp.float32)
    wl = s * jax.random.normal(ks[6], (out_channels, num_classes), jnp.float32)
    bl = s * jax.random.normal(ks[7], (1, num_classes), jnp.float32)
    return (w1_rel, w1_root, b1, w2_rel, w2_root, b2, wl, bl)


def kgnn_reference(x, edge_index, params):
    """Exact f32 reference."""
    n = x.shape[0]
    adj = jnp.zeros((n, n), jnp.float32).at[edge_index[1], edge_index[0]].add(1.0)
    w1_rel, w1_root, b1, w2_rel, w2_root, b2, wl, bl = params
    h1 = adj @ x @ w1_rel + x @ w1_root + b1
    h2 = adj @ h1 @ w2_rel + h1 @ w2_root + b2
    return h2 @ wl + bl


def kgnn_reference_bf16(x, edge_index, params):
    """Reference mirroring the kernel's bf16-operand / f32-accumulate casts."""
    n = x.shape[0]
    adj = (jnp.zeros((n, n), jnp.float32)
           .at[edge_index[1], edge_index[0]].add(1.0).astype(jnp.bfloat16))
    w1_rel, w1_root, b1, w2_rel, w2_root, b2, wl, bl = params

    def dot(a, b):
        return jax.lax.dot(a.astype(jnp.bfloat16), b.astype(jnp.bfloat16),
                           preferred_element_type=jnp.float32)

    xb = x.astype(jnp.bfloat16)
    agg1 = dot(adj, xb)
    h1 = dot(agg1.astype(jnp.bfloat16), w1_rel) + dot(xb, w1_root) + b1
    h1b = h1.astype(jnp.bfloat16)
    w2g = w2_rel @ wl
    w2r = w2_root @ wl
    b2e = b2 @ wl + bl
    g2 = dot(h1b, w2g).astype(jnp.bfloat16)
    r2 = dot(h1b, w2r) + b2e
    return dot(adj, g2) + r2


# ---------------------------------------------------------------------------
# Self-test
# ---------------------------------------------------------------------------
if __name__ == "__main__":
    def run_case(key, num_nodes, num_edges, in_c, hid_c, out_c, n_cls, **kw):
        k_x, k_src, k_dst, k_p = jax.random.split(key, 4)
        x = jax.random.normal(k_x, (num_nodes, in_c), jnp.float32)
        src = jax.random.randint(k_src, (num_edges,), 0, num_nodes, jnp.int32)
        dst = jax.random.randint(k_dst, (num_edges,), 0, num_nodes, jnp.int32)
        edge_index = jnp.stack([src, dst], axis=0)   # [2, E]
        params = init_params(k_p, in_c, hid_c, out_c, n_cls)

        out = jax.block_until_ready(kgnn_forward(x, edge_index, params, **kw))
        assert out.shape == (num_nodes, n_cls)

        ref_bf = kgnn_reference_bf16(x, edge_index, params)
        ref_32 = kgnn_reference(x, edge_index, params)
        assert jnp.allclose(out, ref_bf, atol=1e-2, rtol=1e-2), \
            f"bf16-ref mismatch, max err {float(jnp.max(jnp.abs(out - ref_bf)))}"
        assert jnp.allclose(out, ref_32, atol=7e-2, rtol=7e-2), \
            f"f32-ref mismatch, max err {float(jnp.max(jnp.abs(out - ref_32)))}"

    key = jax.random.PRNGKey(0)
    k1, k2, k3 = jax.random.split(key, 3)
    # Small module-consistent shapes (single 128x128 tile, grid (1, 1)).
    run_case(k1, 16, 40, 8, 32, 16, 4)
    # Mid-size graph, single-tile fast path (640x640 tile, grid (1, 1)).
    run_case(k2, 600, 2400, 8, 32, 16, 4)
    # Same graph, forced multi-tile pipelined accumulation path (grid (3, 3)).
    run_case(k3, 600, 2400, 8, 32, 16, 4, tile=256, single_tile_cap=256)

    print("KERNEL_OK")
</pallas_src>

<mosaic_0001>
module attributes {stable_mosaic.version = 11 : i64} {
  func.func private @main(%arg0: i32) attributes {dimension_semantics = [#tpu.dimension_semantics<core_parallel>], iteration_bounds = array<i64: 2>, tpu.core_type = #tpu.core_type<sc_scalar_subcore>, window_params = []} {
    return
  }
}

module attributes {stable_mosaic.version = 11 : i64} {
  func.func private @main(%arg0: i32) attributes {dimension_semantics = [#tpu.dimension_semantics<core_parallel>], iteration_bounds = array<i64: 2>, tpu.core_type = #tpu.core_type<sc_scalar_subcore>, window_params = []} {
    return
  }
}

module attributes {stable_mosaic.version = 11 : i64} {
  func.func @_layer2_kernel(%arg0: i32, %arg1: i32, %arg2: memref<128x128xbf16, #tpu.memory_space<vmem>>, %arg3: memref<128x128xbf16, #tpu.memory_space<vmem>>, %arg4: memref<128x128xf32, #tpu.memory_space<vmem>>, %arg5: memref<128x128xf32, #tpu.memory_space<vmem>>, %arg6: memref<128x128xf32, #tpu.memory_space<vmem>>) attributes {dimension_semantics = [#tpu.dimension_semantics<parallel>, #tpu.dimension_semantics<arbitrary>], iteration_bounds = array<i64: 1, 1>, scalar_prefetch = 0 : i64, scratch_operands = 1 : i64, tpu.core_type = #tpu.core_type<tc>, window_params = [{transform_indices = @transform_0, window_bounds = array<i64: 128, 128>}, {transform_indices = @transform_1, window_bounds = array<i64: 128, 128>}, {transform_indices = @transform_2, window_bounds = array<i64: 128, 128>}, {transform_indices = @transform_3, window_bounds = array<i64: 128, 128>}]} {
    %c0_i32 = arith.constant 0 : i32
    %0 = arith.cmpi eq, %arg1, %c0_i32 : i32
    %1 = arith.extui %0 : i1 to i32
    %c0_i32_0 = arith.constant 0 : i32
    %2 = arith.cmpi ne, %1, %c0_i32_0 : i32
    scf.if %2 {
      %cst_10 = arith.constant 0.000000e+00 : f32
      %12 = vector.broadcast %cst_10 : f32 to vector<128x128xf32>
      %c0_11 = arith.constant 0 : index
      %c0_12 = arith.constant 0 : index
      %13 = vector.load %arg6[%c0_11, %c0_12] : memref<128x128xf32, #tpu.memory_space<vmem>>, vector<128x128xf32>
      tpu.vector_store %arg6[%c0_11, %c0_12], %12 {strides = array<i32>} : memref<128x128xf32, #tpu.memory_space<vmem>>, vector<128x128xf32>,
    } else {
    }
    %c0 = arith.constant 0 : index
    %c0_1 = arith.constant 0 : index
    %3 = vector.load %arg6[%c0, %c0_1] : memref<128x128xf32, #tpu.memory_space<vmem>>, vector<128x128xf32>
    %c0_2 = arith.constant 0 : index
    %c0_3 = arith.constant 0 : index
    %4 = vector.load %arg2[%c0_2, %c0_3] : memref<128x128xbf16, #tpu.memory_space<vmem>>, vector<128x128xbf16>
    %c0_4 = arith.constant 0 : index
    %c0_5 = arith.constant 0 : index
    %5 = vector.load %arg3[%c0_4, %c0_5] : memref<128x128xbf16, #tpu.memory_space<vmem>>, vector<128x128xbf16>
    %cst = arith.constant dense<0.000000e+00> : vector<128x128xf32>
    %6 = tpu.matmul %4, %5, %cst {dimension_numbers = #tpu.dot_dimension_numbers<[1], [0], [0], [1], [0, 0, 1, 1], [], []>} : vector<128x128xbf16>, vector<128x128xbf16>, vector<128x128xf32> -> vector<128x128xf32>
    %7 = arith.addf %3, %6 : vector<128x128xf32>
    %c0_6 = arith.constant 0 : index
    %c0_7 = arith.constant 0 : index
    %8 = vector.load %arg6[%c0_6, %c0_7] : memref<128x128xf32, #tpu.memory_space<vmem>>, vector<128x128xf32>
    tpu.vector_store %arg6[%c0_6, %c0_7], %7 {strides = array<i32>} : memref<128x128xf32, #tpu.memory_space<vmem>>, vector<128x128xf32>,
    %c0_i32_8 = arith.constant 0 : i32
    %9 = arith.cmpi eq, %arg1, %c0_i32_8 : i32
    %10 = arith.extui %9 : i1 to i32
    %c0_i32_9 = arith.constant 0 : i32
    %11 = arith.cmpi ne, %10, %c0_i32_9 : i32
    scf.if %11 {
      %c0_10 = arith.constant 0 : index
      %c0_11 = arith.constant 0 : index
      %12 = vector.load %arg6[%c0_10, %c0_11] : memref<128x128xf32, #tpu.memory_space<vmem>>, vector<128x128xf32>
      %c0_12 = arith.constant 0 : index
      %c0_13 = arith.constant 0 : index
      %13 = vector.load %arg4[%c0_12, %c0_13] : memref<128x128xf32, #tpu.memory_space<vmem>>, vector<128x128xf32>
      %14 = arith.addf %12, %13 : vector<128x128xf32>
      %c0_14 = arith.constant 0 : index
      %c0_15 = arith.constant 0 : index
      %15 = vector.load %arg5[%c0_14, %c0_15] : memref<128x128xf32, #tpu.memory_space<vmem>>, vector<128x128xf32>
      tpu.vector_store %arg5[%c0_14, %c0_15], %14 {strides = array<i32>} : memref<128x128xf32, #tpu.memory_space<vmem>>, vector<128x128xf32>,
    } else {
    }
    return
  }
  func.func @transform_0(%arg0: i32, %arg1: i32) -> (i32, i32) {
    %c0_i32 = arith.constant 0 : i32
    return %arg0, %arg1 : i32, i32
  }
  func.func @transform_1(%arg0: i32, %arg1: i32) -> (i32, i32) {
    %c0_i32 = arith.constant 0 : i32
    %c0_i32_0 = arith.constant 0 : i32
    return %arg1, %c0_i32 : i32, i32
  }
  func.func @transform_2(%arg0: i32, %arg1: i32) -> (i32, i32) {
    %c0_i32 = arith.constant 0 : i32
    %c0_i32_0 = arith.constant 0 : i32
    return %arg0, %c0_i32 : i32, i32
  }
  func.func @transform_3(%arg0: i32, %arg1: i32) -> (i32, i32) {
    %c0_i32 = arith.constant 0 : i32
    %c0_i32_0 = arith.constant 0 : i32
    return %arg0, %c0_i32 : i32, i32
  }
}

module attributes {stable_mosaic.version = 11 : i64} {
  func.func @_layer1_kernel(%arg0: i32, %arg1: i32, %arg2: memref<128x128xbf16, #tpu.memory_space<vmem>>, %arg3: memref<128x128xbf16, #tpu.memory_space<vmem>>, %arg4: memref<128x128xbf16, #tpu.memory_space<vmem>>, %arg5: memref<256x128xbf16, #tpu.memory_space<vmem>>, %arg6: memref<1x128xf32, #tpu.memory_space<vmem>>, %arg7: memref<128x128xbf16, #tpu.memory_space<vmem>>, %arg8: memref<128x128xbf16, #tpu.memory_space<vmem>>, %arg9: memref<1x128xf32, #tpu.memory_space<vmem>>, %arg10: memref<128x128xbf16, #tpu.memory_space<vmem>>, %arg11: memref<128x128xf32, #tpu.memory_space<vmem>>, %arg12: memref<128x128xf32, #tpu.memory_space<vmem>>) attributes {dimension_semantics = [#tpu.dimension_semantics<parallel>, #tpu.dimension_semantics<arbitrary>], iteration_bounds = array<i64: 1, 1>, scalar_prefetch = 0 : i64, scratch_operands = 1 : i64, tpu.core_type = #tpu.core_type<tc>, window_params = [{transform_indices = @transform_0, window_bounds = array<i64: 128, 128>}, {transform_indices = @transform_1, window_bounds = array<i64: 128, 128>}, {transform_indices = @transform_2, window_bounds = array<i64: 128, 128>}, {pipeline_mode = #tpu.pipeline_mode<synchronous>, transform_indices = @transform_3, window_bounds = array<i64: 256, 128>}, {pipeline_mode = #tpu.pipeline_mode<synchronous>, transform_indices = @transform_4, window_bounds = array<i64: 1, 128>}, {pipeline_mode = #tpu.pipeline_mode<synchronous>, transform_indices = @transform_5, window_bounds = array<i64: 128, 128>}, {pipeline_mode = #tpu.pipeline_mode<synchronous>, transform_indices = @transform_6, window_bounds = array<i64: 128, 128>}, {pipeline_mode = #tpu.pipeline_mode<synchronous>, transform_indices = @transform_7, window_bounds = array<i64: 1, 128>}, {transform_indices = @transform_8, window_bounds = array<i64: 128, 128>}, {transform_indices = @transform_9, window_bounds = array<i64: 128, 128>}]} {
    %c0_i32 = arith.constant 0 : i32
    %0 = arith.cmpi eq, %arg1, %c0_i32 : i32
    %1 = arith.extui %0 : i1 to i32
    %c0_i32_0 = arith.constant 0 : i32
    %2 = arith.cmpi ne, %1, %c0_i32_0 : i32
    scf.if %2 {
      %cst_10 = arith.constant 0.000000e+00 : f32
      %12 = vector.broadcast %cst_10 : f32 to vector<128x128xf32>
      %c0_11 = arith.constant 0 : index
      %c0_12 = arith.constant 0 : index
      %13 = vector.load %arg12[%c0_11, %c0_12] : memref<128x128xf32, #tpu.memory_space<vmem>>, vector<128x128xf32>
      tpu.vector_store %arg12[%c0_11, %c0_12], %12 {strides = array<i32>} : memref<128x128xf32, #tpu.memory_space<vmem>>, vector<128x128xf32>,
    } else {
    }
    %c0 = arith.constant 0 : index
    %c0_1 = arith.constant 0 : index
    %3 = vector.load %arg12[%c0, %c0_1] : memref<128x128xf32, #tpu.memory_space<vmem>>, vector<128x128xf32>
    %c0_2 = arith.constant 0 : index
    %c0_3 = arith.constant 0 : index
    %4 = vector.load %arg4[%c0_2, %c0_3] : memref<128x128xbf16, #tpu.memory_space<vmem>>, vector<128x128xbf16>
    %c0_4 = arith.constant 0 : index
    %c0_5 = arith.constant 0 : index
    %5 = vector.load %arg3[%c0_4, %c0_5] : memref<128x128xbf16, #tpu.memory_space<vmem>>, vector<128x128xbf16>
    %cst = arith.constant dense<0.000000e+00> : vector<128x128xf32>
    %6 = tpu.matmul %4, %5, %cst {dimension_numbers = #tpu.dot_dimension_numbers<[1], [0], [0], [1], [0, 0, 1, 1], [], []>} : vector<128x128xbf16>, vector<128x128xbf16>, vector<128x128xf32> -> vector<128x128xf32>
    %7 = arith.addf %3, %6 : vector<128x128xf32>
    %c0_6 = arith.constant 0 : index
    %c0_7 = arith.constant 0 : index
    %8 = vector.load %arg12[%c0_6, %c0_7] : memref<128x128xf32, #tpu.memory_space<vmem>>, vector<128x128xf32>
    tpu.vector_store %arg12[%c0_6, %c0_7], %7 {strides = array<i32>} : memref<128x128xf32, #tpu.memory_space<vmem>>, vector<128x128xf32>,
    %c0_i32_8 = arith.constant 0 : i32
    %9 = arith.cmpi eq, %arg1, %c0_i32_8 : i32
    %10 = arith.extui %9 : i1 to i32
    %c0_i32_9 = arith.constant 0 : i32
    %11 = arith.cmpi ne, %10, %c0_i32_9 : i32
    scf.if %11 {
      %c0_10 = arith.constant 0 : index
      %c0_11 = arith.constant 0 : index
      %12 = vector.load %arg12[%c0_10, %c0_11] : memref<128x128xf32, #tpu.memory_space<vmem>>, vector<128x128xf32>
      %13 = arith.truncf %12 : vector<128x128xf32> to vector<128x128xbf16>
      %c0_12 = arith.constant 0 : index
      %c0_13 = arith.constant 0 : index
      %14 = vector.load %arg2[%c0_12, %c0_13] : memref<128x128xbf16, #tpu.memory_space<vmem>>, vector<128x128xbf16>
      %15 = tpu.concatenate %13, %14 in 1 : vector<128x128xbf16>, vector<128x128xbf16> -> vector<128x256xbf16>
      %c0_14 = arith.constant 0 : index
      %c0_15 = arith.constant 0 : index
      %16 = vector.load %arg5[%c0_14, %c0_15] : memref<256x128xbf16, #tpu.memory_space<vmem>>, vector<256x128xbf16>
      %cst_16 = arith.constant dense<0.000000e+00> : vector<128x128xf32>
      %17 = tpu.matmul %15, %16, %cst_16 {dimension_numbers = #tpu.dot_dimension_numbers<[1], [0], [0], [1], [0, 0, 1, 1], [], []>} : vector<128x256xbf16>, vector<256x128xbf16>, vector<128x128xf32> -> vector<128x128xf32>
      %c0_17 = arith.constant 0 : index
      %c0_18 = arith.constant 0 : index
      %18 = vector.load %arg6[%c0_17, %c0_18] : memref<1x128xf32, #tpu.memory_space<vmem>>, vector<1x128xf32>
      %19 = vector.broadcast %18 : vector<1x128xf32> to vector<128x128xf32>
      %20 = arith.addf %17, %19 : vector<128x128xf32>
      %21 = arith.truncf %20 : vector<128x128xf32> to vector<128x128xbf16>
      %c0_19 = arith.constant 0 : index
      %c0_20 = arith.constant 0 : index
      %22 = vector.load %arg7[%c0_19, %c0_20] : memref<128x128xbf16, #tpu.memory_space<vmem>>, vector<128x128xbf16>
      %cst_21 = arith.constant dense<0.000000e+00> : vector<128x128xf32>
      %23 = tpu.matmul %21, %22, %cst_21 {dimension_numbers = #tpu.dot_dimension_numbers<[1], [0], [0], [1], [0, 0, 1, 1], [], []>} : vector<128x128xbf16>, vector<128x128xbf16>, vector<128x128xf32> -> vector<128x128xf32>
      %24 = arith.truncf %23 : vector<128x128xf32> to vector<128x128xbf16>
      %c0_22 = arith.constant 0 : index
      %c0_23 = arith.constant 0 : index
      %25 = vector.load %arg10[%c0_22, %c0_23] : memref<128x128xbf16, #tpu.memory_space<vmem>>, vector<128x128xbf16>
      tpu.vector_store %arg10[%c0_22, %c0_23], %24 {strides = array<i32>} : memref<128x128xbf16, #tpu.memory_space<vmem>>, vector<128x128xbf16>,
      %c0_24 = arith.constant 0 : index
      %c0_25 = arith.constant 0 : index
      %26 = vector.load %arg8[%c0_24, %c0_25] : memref<128x128xbf16, #tpu.memory_space<vmem>>, vector<128x128xbf16>
      %cst_26 = arith.constant dense<0.000000e+00> : vector<128x128xf32>
      %27 = tpu.matmul %21, %26, %cst_26 {dimension_numbers = #tpu.dot_dimension_numbers<[1], [0], [0], [1], [0, 0, 1, 1], [], []>} : vector<128x128xbf16>, vector<128x128xbf16>, vector<128x128xf32> -> vector<128x128xf32>
      %c0_27 = arith.constant 0 : index
      %c0_28 = arith.constant 0 : index
      %28 = vector.load %arg9[%c0_27, %c0_28] : memref<1x128xf32, #tpu.memory_space<vmem>>, vector<1x128xf32>
      %29 = vector.broadcast %28 : vector<1x128xf32> to vector<128x128xf32>
      %30 = arith.addf %27, %29 : vector<128x128xf32>
      %c0_29 = arith.constant 0 : index
      %c0_30 = arith.constant 0 : index
      %31 = vector.load %arg11[%c0_29, %c0_30] : memref<128x128xf32, #tpu.memory_space<vmem>>, vector<128x128xf32>
      tpu.vector_store %arg11[%c0_29, %c0_30], %30 {strides = array<i32>} : memref<128x128xf32, #tpu.memory_space<vmem>>, vector<128x128xf32>,
    } else {
    }
    return
  }
  func.func @transform_0(%arg0: i32, %arg1: i32) -> (i32, i32) {
    %c0_i32 = arith.constant 0 : i32
    %c0_i32_0 = arith.constant 0 : i32
    return %arg0, %c0_i32 : i32, i32
  }
  func.func @transform_1(%arg0: i32, %arg1: i32) -> (i32, i32) {
    %c0_i32 = arith.constant 0 : i32
    %c0_i32_0 = arith.constant 0 : i32
    return %arg1, %c0_i32 : i32, i32
  }
  func.func @transform_2(%arg0: i32, %arg1: i32) -> (i32, i32) {
    %c0_i32 = arith.constant 0 : i32
    return %arg0, %arg1 : i32, i32
  }
  func.func @transform_3(%arg0: i32, %arg1: i32) -> (i32, i32) {
    %c0_i32 = arith.constant 0 : i32
    %c0_i32_0 = arith.constant 0 : i32
    %c0_i32_1 = arith.constant 0 : i32
    return %c0_i32, %c0_i32_0 : i32, i32
  }
  func.func @transform_4(%arg0: i32, %arg1: i32) -> (i32, i32) {
    %c0_i32 = arith.constant 0 : i32
    %c0_i32_0 = arith.constant 0 : i32
    %c0_i32_1 = arith.constant 0 : i32
    return %c0_i32, %c0_i32_0 : i32, i32
  }
  func.func @transform_5(%arg0: i32, %arg1: i32) -> (i32, i32) {
    %c0_i32 = arith.constant 0 : i32
    %c0_i32_0 = arith.constant 0 : i32
    %c0_i32_1 = arith.constant 0 : i32
    return %c0_i32, %c0_i32_0 : i32, i32
  }
  func.func @transform_6(%arg0: i32, %arg1: i32) -> (i32, i32) {
    %c0_i32 = arith.constant 0 : i32
    %c0_i32_0 = arith.constant 0 : i32
    %c0_i32_1 = arith.constant 0 : i32
    return %c0_i32, %c0_i32_0 : i32, i32
  }
  func.func @transform_7(%arg0: i32, %arg1: i32) -> (i32, i32) {
    %c0_i32 = arith.constant 0 : i32
    %c0_i32_0 = arith.constant 0 : i32
    %c0_i32_1 = arith.constant 0 : i32
    return %c0_i32, %c0_i32_0 : i32, i32
  }
  func.func @transform_8(%arg0: i32, %arg1: i32) -> (i32, i32) {
    %c0_i32 = arith.constant 0 : i32
    %c0_i32_0 = arith.constant 0 : i32
    return %arg0, %c0_i32 : i32, i32
  }
  func.func @transform_9(%arg0: i32, %arg1: i32) -> (i32, i32) {
    %c0_i32 = arith.constant 0 : i32
    %c0_i32_0 = arith.constant 0 : i32
    return %arg0, %c0_i32 : i32, i32
  }
}

</mosaic_0001>

<bundles_post_ra>
// kernel: kgnn_forward.3
= control target key start
LH: loop header
LB: loop body
LE: loop exit
PB: predicated region body
PF: predicated region fallthrough
CT: control target
= control target key end

     0   :  { %s639_s1 = inlined_call_operand.vmem [shape: bf16[128,128], index: 1, kind: input, shape index: {}]   ;;  %s640_s0 = inlined_call_operand.vmem [shape: bf16[128,128], index: 0, kind: input, shape index: {}]   ;;  %s641_s2 = inlined_call_operand.vmem [shape: f32[128,128], index: 2, kind: input, shape index: {}]   ;;  %s642_s3 = inlined_call_operand.vmem [shape: f32[128,128], index: 3, kind: output, shape index: {}]  }
   0x1   :  { %v459_v0 = vld [vmem:[%s639_s1 + $0x38] sm:$0xff]   ;;  %v460_v1 = vld [vmem:[%s639_s1 + $0x30] sm:$0xff]   ;;  %v461_v2 = vld [vmem:[%s639_s1 + $0x28] sm:$0xff]  }
   0x2   :  { %411 = vmatprep.subr.bf16.mxu0 %v459_v0  ;;  %443 = vmatprep.subr.bf16.mxu1 %v459_v0  ;;  %v462_v3 = vld [vmem:[%s639_s1 + $0x20] sm:$0xff]   ;;  %v463_v6 = vld [vmem:[%s639_s1 + $0x18] sm:$0xff]   ;;  %v464_v7 = vld [vmem:[%s639_s1 + $0x10] sm:$0xff]  }
   0x3   :  { %412 = vmatpush3.bf16.msra.mxu0 %v459_v0  ;;  %451 = vmatpush3.bf16.msra.mxu1 %v459_v0  ;;  %v467_v4 = vld [vmem:[%s640_s0] sm:$0xff]   ;;  %v465_v8 = vld [vmem:[%s639_s1 + $0x8] sm:$0xff]   ;;  %v471_v12 = vld [vmem:[%s640_s0 + $0x10] sm:$0xff]  }
   0x4   :  { %413 = vmatprep.subr.bf16.mxu0 %v460_v1  ;;  %444 = vmatprep.subr.bf16.mxu1 %v460_v1  ;;  %v468_v5 = vld [vmem:[%s640_s0 + $0x20] sm:$0xff]   ;;  %v469_v10 = vld [vmem:[%s640_s0 + $0x8] sm:$0xff]   ;;  %v472_v13 = vld [vmem:[%s640_s0 + $0x30] sm:$0xff]  }
   0x5   :  { %427 = vmatprep.mubr.bf16.mxu0 %v467_v4  ;;  %435 = vmatprep.mubr.bf16.mxu1 %v468_v5  ;;  %v466_v9 = vld [vmem:[%s639_s1] sm:$0xff]   ;;  %v470_v11 = vld [vmem:[%s640_s0 + $0x28] sm:$0xff]   ;;  %v473_v14 = vld [vmem:[%s640_s0 + $0x18] sm:$0xff]  }
   0x6   :  { %v474_v15 = vld [vmem:[%s640_s0 + $0x38] sm:$0xff]   ;;  %v329_v16 = vld [vmem:[%s641_s2 + $0x10] sm:$0xff]  ;;  %v327_v20 = vld [vmem:[%s641_s2] sm:$0xff] }
   0x7   :  { %414 = vmatpush3.bf16.msra.mxu0 %v460_v1  ;;  %452 = vmatpush3.bf16.msra.mxu1 %v460_v1  ;;  %v337_v17 = vld [vmem:[%s641_s2 + $0x50] sm:$0xff]  ;;  %v335_v21 = vld [vmem:[%s641_s2 + $0x40] sm:$0xff]  ;;  %v330_v26 = vld [vmem:[%s641_s2 + $0x18] sm:$0xff] }
   0x8   :  { %415 = vmatprep.subr.bf16.mxu0 %v461_v2  ;;  %445 = vmatprep.subr.bf16.mxu1 %v461_v2  ;;  %v338_v27 = vld [vmem:[%s641_s2 + $0x58] sm:$0xff]  ;;  %v328_v32 = vld [vmem:[%s641_s2 + $0x8] sm:$0xff]  ;;  %v333_v38 = vld [vmem:[%s641_s2 + $0x30] sm:$0xff] }
   0x9   :  { %v336_v33 = vld [vmem:[%s641_s2 + $0x48] sm:$0xff]  ;;  %v341_v39 = vld [vmem:[%s641_s2 + $0x70] sm:$0xff]  ;;  %v331_v44 = vld [vmem:[%s641_s2 + $0x20] sm:$0xff] }
   0xa   :  { %v339_v45 = vld [vmem:[%s641_s2 + $0x60] sm:$0xff]  ;;  %v334_v50 = vld [vmem:[%s641_s2 + $0x38] sm:$0xff]  ;;  %v332_v56 = vld [vmem:[%s641_s2 + $0x28] sm:$0xff] }
   0xb   :  { %416 = vmatpush3.bf16.msra.mxu0 %v461_v2  ;;  %453 = vmatpush3.bf16.msra.mxu1 %v461_v2  ;;  %v342_v51 = vld [vmem:[%s641_s2 + $0x78] sm:$0xff]  ;;  %v340_v57 = vld [vmem:[%s641_s2 + $0x68] sm:$0xff] }
   0xc   :  { %417 = vmatprep.subr.bf16.mxu0 %v462_v3  ;;  %446 = vmatprep.subr.bf16.mxu1 %v462_v3 }
   0xf   :  { %418 = vmatpush3.bf16.msra.mxu0 %v462_v3  ;;  %454 = vmatpush3.bf16.msra.mxu1 %v462_v3 }
  0x10   :  { %419 = vmatprep.subr.bf16.mxu0 %v463_v6  ;;  %447 = vmatprep.subr.bf16.mxu1 %v463_v6 }
  0x13   :  { %420 = vmatpush3.bf16.msra.mxu0 %v463_v6  ;;  %455 = vmatpush3.bf16.msra.mxu1 %v463_v6 }
  0x14   :  { %421 = vmatprep.subr.bf16.mxu0 %v464_v7  ;;  %448 = vmatprep.subr.bf16.mxu1 %v464_v7 }
  0x17   :  { %422 = vmatpush3.bf16.msra.mxu0 %v464_v7  ;;  %456 = vmatpush3.bf16.msra.mxu1 %v464_v7 }
  0x18   :  { %423 = vmatprep.subr.bf16.mxu0 %v465_v8  ;;  %449 = vmatprep.subr.bf16.mxu1 %v465_v8 }
  0x1b   :  { %424 = vmatpush3.bf16.msra.mxu0 %v465_v8  ;;  %457 = vmatpush3.bf16.msra.mxu1 %v465_v8 }
  0x1c   :  { %425 = vmatprep.subr.bf16.mxu0 %v466_v9  ;;  %450 = vmatprep.subr.bf16.mxu1 %v466_v9 }
  0x1f   :  { %426 = vmatpush3.bf16.msra.mxu0 %v466_v9  ;;  %458 = vmatpush3.bf16.msra.mxu1 %v466_v9 }
  0x22   :  { %428 = vmatmul.mubr.bf16.vlgmr.msra.gmra.mxu0 %v469_v10  ;;  %436 = vmatmul.mubr.bf16.vlgmr.msra.gmra.mxu1 %v470_v11 }
  0x23   :  { %431 = vmatprep.mubr.bf16.mxu0 %v471_v12  ;;  %439 = vmatprep.mubr.bf16.mxu1 %v472_v13 }
  0x2a   :  { %432 = vmatmul.mubr.bf16.gmra.mxu0 %v473_v14  ;;  %440 = vmatmul.mubr.bf16.gmra.mxu1 %v474_v15 }
  0xe2   :  { %v429_v18 = vpop.f32.mrf.mxu0  ;;  %v437_v19 = vpop.f32.mrf.mxu1 }
  0xe3   :  { %v345_v22 = vadd.f32 %v429_v18, %v329_v16  ;;  %v353_v23 = vadd.f32 %v437_v19, %v337_v17 }
  0xe4   :  { %v213_v24 = vpop.f32.mrf.mxu0  ;;  %v245_v25 = vpop.f32.mrf.mxu1 }
  0xe5   :  { %361 = vst [vmem:[%s642_s3 + $0x10] sm:$0xff] %v345_v22  ;;  %369 = vst [vmem:[%s642_s3 + $0x50] sm:$0xff] %v353_v23  ;;  %v343_v28 = vadd.f32 %v327_v20, %v213_v24  ;;  %v351_v29 = vadd.f32 %v335_v21, %v245_v25 }
  0xe6   :  { %v430_v30 = vpop.f32.mrf.mxu0  ;;  %v438_v31 = vpop.f32.mrf.mxu1 }
  0xe7   :  { %359 = vst [vmem:[%s642_s3] sm:$0xff] %v343_v28  ;;  %367 = vst [vmem:[%s642_s3 + $0x40] sm:$0xff] %v351_v29  ;;  %v346_v34 = vadd.f32 %v430_v30, %v330_v26  ;;  %v354_v35 = vadd.f32 %v438_v31, %v338_v27 }
  0xe8   :  { %v216_v36 = vpop.f32.mrf.mxu0  ;;  %v248_v37 = vpop.f32.mrf.mxu1 }
  0xe9   :  { %362 = vst [vmem:[%s642_s3 + $0x18] sm:$0xff] %v346_v34  ;;  %370 = vst [vmem:[%s642_s3 + $0x58] sm:$0xff] %v354_v35  ;;  %v344_v40 = vadd.f32 %v328_v32, %v216_v36  ;;  %v352_v41 = vadd.f32 %v336_v33, %v248_v37 }
  0xea   :  { %v433_v42 = vpop.f32.mrf.mxu0  ;;  %v441_v43 = vpop.f32.mrf.mxu1 }
  0xeb   :  { %360 = vst [vmem:[%s642_s3 + $0x8] sm:$0xff] %v344_v40  ;;  %368 = vst [vmem:[%s642_s3 + $0x48] sm:$0xff] %v352_v41  ;;  %v349_v46 = vadd.f32 %v433_v42, %v333_v38  ;;  %v357_v47 = vadd.f32 %v441_v43, %v341_v39 }
  0xec   :  { %v229_v48 = vpop.f32.mrf.mxu0  ;;  %v261_v49 = vpop.f32.mrf.mxu1 }
  0xed   :  { %365 = vst [vmem:[%s642_s3 + $0x30] sm:$0xff] %v349_v46  ;;  %373 = vst [vmem:[%s642_s3 + $0x70] sm:$0xff] %v357_v47  ;;  %v347_v52 = vadd.f32 %v331_v44, %v229_v48  ;;  %v355_v53 = vadd.f32 %v339_v45, %v261_v49 }
  0xee   :  { %v434_v54 = vpop.f32.mrf.mxu0  ;;  %v442_v55 = vpop.f32.mrf.mxu1 }
  0xef   :  { %363 = vst [vmem:[%s642_s3 + $0x20] sm:$0xff] %v347_v52  ;;  %371 = vst [vmem:[%s642_s3 + $0x60] sm:$0xff] %v355_v53  ;;  %v350_v58 = vadd.f32 %v434_v54, %v334_v50  ;;  %v358_v59 = vadd.f32 %v442_v55, %v342_v51 }
  0xf0   :  { %v232_v60 = vpop.f32.mrf.mxu0  ;;  %v264_v61 = vpop.f32.mrf.mxu1 }
  0xf1   :  { %366 = vst [vmem:[%s642_s3 + $0x38] sm:$0xff] %v350_v58  ;;  %374 = vst [vmem:[%s642_s3 + $0x78] sm:$0xff] %v358_v59  ;;  %v348_v62 = vadd.f32 %v332_v56, %v232_v60  ;;  %v356_v63 = vadd.f32 %v340_v57, %v264_v61 }
  0xf3   :  { %364 = vst [vmem:[%s642_s3 + $0x28] sm:$0xff] %v348_v62  ;;  %372 = vst [vmem:[%s642_s3 + $0x68] sm:$0xff] %v356_v63 }

// kernel: kgnn_forward.2
= control target key start
LH: loop header
LB: loop body
LE: loop exit
PB: predicated region body
PF: predicated region fallthrough
CT: control target
= control target key end

     0   :  { %s1874_s1 = inlined_call_operand.vmem [shape: bf16[128,128], index: 1, kind: input, shape index: {}, may-alias: {0,1}]   ;;  %s1875_s2 = inlined_call_operand.vmem [shape: bf16[128,128], index: 2, kind: input, shape index: {}]   ;;  %s1876_s3 = inlined_call_operand.vmem [shape: bf16[256,128], index: 3, kind: input, shape index: {}]   ;;  %s1877_s0 = inlined_call_operand.vmem [shape: bf16[128,128], index: 0, kind: input, shape index: {}, may-alias: {0,1}]   ;;  %s1878_s5 = inlined_call_operand.vmem [shape: bf16[128,128], index: 5, kind: input, shape index: {}]   ;;  %s1879_s6 = inlined_call_operand.vmem [shape: bf16[128,128], index: 6, kind: input, shape index: {}]   ;;  %s1880_s4 = inlined_call_operand.vmem [shape: f32[1,128], index: 4, kind: input, shape index: {}]   ;;  %s1881_s8 = inlined_call_operand.vmem [shape: bf16[128,128], index: 8, kind: output, shape index: {0}]   ;;  %s1882_s7 = inlined_call_operand.vmem [shape: f32[1,128], index: 7, kind: input, shape index: {}]   ;;  %s1883_s9 = inlined_call_operand.vmem [shape: f32[128,128], index: 9, kind: output, shape index: {1}]  }
   0x1   :  { %v1450_v0 = vld [vmem:[%s1874_s1 + $0x38] sm:$0xff]   ;;  %v1451_v1 = vld [vmem:[%s1874_s1 + $0x30] sm:$0xff]   ;;  %v1452_v2 = vld [vmem:[%s1874_s1 + $0x28] sm:$0xff]  }
   0x2   :  { %1338 = vmatprep.subr.bf16.mxu0 %v1450_v0  ;;  %v1453_v3 = vld [vmem:[%s1874_s1 + $0x20] sm:$0xff]   ;;  %v1454_v5 = vld [vmem:[%s1874_s1 + $0x18] sm:$0xff]   ;;  %v1455_v6 = vld [vmem:[%s1874_s1 + $0x10] sm:$0xff]  }
   0x3   :  { %1339 = vmatpush3.bf16.msra.mxu0 %v1450_v0  ;;  %v1458_v4 = vld [vmem:[%s1875_s2] sm:$0xff]   ;;  %v1466_v7 = vld [vmem:[%s1876_s3 + $0x78] sm:$0xff]   ;;  %v1456_v9 = vld [vmem:[%s1874_s1 + $0x8] sm:$0xff]  }
   0x4   :  { %1340 = vmatprep.subr.bf16.mxu0 %v1451_v1  ;;  %1354 = vmatprep.mubr.bf16.mxu0 %v1458_v4  ;;  %v1467_v8 = vld [vmem:[%s1876_s3 + $0x38] sm:$0xff]   ;;  %v1468_v10 = vld [vmem:[%s1876_s3 + $0x70] sm:$0xff]   ;;  %v1470_v12 = vld [vmem:[%s1876_s3 + $0x68] sm:$0xff]  }
   0x5   :  { %1242 = vmatprep.subr.bf16.mxu1 %v1466_v7  ;;  %v1469_v11 = vld [vmem:[%s1876_s3 + $0x30] sm:$0xff]   ;;  %v1457_v13 = vld [vmem:[%s1874_s1] sm:$0xff]   ;;  %v1471_v14 = vld [vmem:[%s1876_s3 + $0x28] sm:$0xff]  }
   0x6   :  { %1243 = vmatpush3.bf16.msra.mxu1 %v1467_v8  ;;  %v1472_v15 = vld [vmem:[%s1876_s3 + $0x60] sm:$0xff]   ;;  %v1474_v17 = vld [vmem:[%s1876_s3 + $0x58] sm:$0xff]   ;;  %v1459_v18 = vld [vmem:[%s1875_s2 + $0x8] sm:$0xff]  }
   0x7   :  { %1341 = vmatpush3.bf16.msra.mxu0 %v1451_v1  ;;  %1244 = vmatprep.subr.bf16.mxu1 %v1468_v10  ;;  %v1473_v16 = vld [vmem:[%s1876_s3 + $0x20] sm:$0xff]   ;;  %v1460_v19 = vld [vmem:[%s1875_s2 + $0x10] sm:$0xff]   ;;  %v1475_v20 = vld [vmem:[%s1876_s3 + $0x18] sm:$0xff]  }
   0x8   :  { %1342 = vmatprep.subr.bf16.mxu0 %v1452_v2  ;;  %v1476_v21 = vld [vmem:[%s1876_s3 + $0x50] sm:$0xff]   ;;  %v1461_v23 = vld [vmem:[%s1875_s2 + $0x18] sm:$0xff]   ;;  %v1462_v24 = vld [vmem:[%s1875_s2 + $0x20] sm:$0xff]  }
   0x9   :  { %v1477_v22 = vld [vmem:[%s1876_s3 + $0x10] sm:$0xff]   ;;  %v1463_v25 = vld [vmem:[%s1875_s2 + $0x28] sm:$0xff]   ;;  %v1465_v27 = vld [vmem:[%s1875_s2 + $0x38] sm:$0xff]  }
   0xa   :  { %1245 = vmatpush3.bf16.msra.mxu1 %v1469_v11  ;;  %v1464_v26 = vld [vmem:[%s1875_s2 + $0x30] sm:$0xff]   ;;  %v1478_v28 = vld [vmem:[%s1876_s3 + $0x48] sm:$0xff]   ;;  %v1480_v30 = vld [vmem:[%s1876_s3 + $0x40] sm:$0xff]  }
   0xb   :  { %1343 = vmatpush3.bf16.msra.mxu0 %v1452_v2  ;;  %1246 = vmatprep.subr.bf16.mxu1 %v1470_v12  ;;  %v1479_v29 = vld [vmem:[%s1876_s3 + $0x8] sm:$0xff]   ;;  %v1481_v31 = vld [vmem:[%s1876_s3] sm:$0xff]   ;;  %v1490_v33 = vld [vmem:[%s1878_s5 + $0x38] sm:$0xff]  }
   0xc   :  { %1344 = vmatprep.subr.bf16.mxu0 %v1453_v3  ;;  %v1482_v32 = vld [vmem:[%s1877_s0] sm:$0xff]   ;;  %v1491_v34 = vld [vmem:[%s1878_s5 + $0x30] sm:$0xff]   ;;  %v1492_v35 = vld [vmem:[%s1878_s5 + $0x28] sm:$0xff]  }
   0xd   :  { %583 = vmatprep.mubr.bf16.mxu1 %v1482_v32  ;;  %v1483_v40 = vld [vmem:[%s1877_s0 + $0x8] sm:$0xff]   ;;  %v1484_v44 = vld [vmem:[%s1877_s0 + $0x10] sm:$0xff]   ;;  %v1485_v48 = vld [vmem:[%s1877_s0 + $0x18] sm:$0xff]  }
   0xe   :  { %1247 = vmatpush3.bf16.msra.mxu1 %v1471_v14  ;;  %v1486_v52 = vld [vmem:[%s1877_s0 + $0x20] sm:$0xff]   ;;  %v1487_v56 = vld [vmem:[%s1877_s0 + $0x28] sm:$0xff]   ;;  %v1488_v60 = vld [vmem:[%s1877_s0 + $0x30] sm:$0xff]  }
   0xf   :  { %1345 = vmatpush3.bf16.msra.mxu0 %v1453_v3  ;;  %1248 = vmatprep.subr.bf16.mxu1 %v1472_v15  ;;  %v1489_v0 = vld [vmem:[%s1877_s0 + $0x38] sm:$0xff]   ;;  %v1493_v3 = vld [vmem:[%s1878_s5 + $0x20] sm:$0xff]   ;;  %v1500_v10 = vld [vmem:[%s1879_s6 + $0x28] sm:$0xff]  }
  0x10   :  { %1346 = vmatprep.subr.bf16.mxu0 %v1454_v5  ;;  %v1494_v4 = vld [vmem:[%s1878_s5 + $0x18] sm:$0xff]   ;;  %v1498_v8 = vld [vmem:[%s1878_s5] sm:$0xff]   ;;  %v1729_v14 = vld [vmem:[%s1879_s6 + $0x8] sm:$0xff]  }
  0x11   :  { %v1496_v7 = vld [vmem:[%s1879_s6 + $0x38] sm:$0xff]   ;;  %v1501_v11 = vld [vmem:[%s1879_s6 + $0x20] sm:$0xff]  }
  0x12   :  { %1249 = vmatpush3.bf16.msra.mxu1 %v1473_v16  ;;  %v1715_v12 = vld [vmem:[%s1879_s6 + $0x18] sm:$0xff]   ;;  %v1736_v15 = vld [vmem:[%s1879_s6] sm:$0xff]  }
  0x13   :  { %1347 = vmatpush3.bf16.msra.mxu0 %v1454_v5  ;;  %1250 = vmatprep.subr.bf16.mxu1 %v1474_v17  ;;  %v1495_v5 = vld [vmem:[%s1878_s5 + $0x10] sm:$0xff]  }
  0x14   :  { %1348 = vmatprep.subr.bf16.mxu0 %v1455_v6 }
  0x16   :  { %1251 = vmatpush3.bf16.msra.mxu1 %v1475_v20  ;;  %v1743_v20 = vld [vmem:[%s1880_s4] ss:$0 sm:$0xff] }
  0x17   :  { %1349 = vmatpush3.bf16.msra.mxu0 %v1455_v6  ;;  %1252 = vmatprep.subr.bf16.mxu1 %v1476_v21  ;;  %v1497_v6 = vld [vmem:[%s1878_s5 + $0x8] sm:$0xff]  }
  0x18   :  { %1350 = vmatprep.subr.bf16.mxu0 %v1456_v9 }
  0x1a   :  { %1253 = vmatpush3.bf16.msra.mxu1 %v1477_v22 }
  0x1b   :  { %1351 = vmatpush3.bf16.msra.mxu0 %v1456_v9  ;;  %1254 = vmatprep.subr.bf16.mxu1 %v1478_v28  ;;  %v1499_v9 = vld [vmem:[%s1879_s6 + $0x30] sm:$0xff]  }
  0x1c   :  { %1352 = vmatprep.subr.bf16.mxu0 %v1457_v13 }
  0x1e   :  { %1255 = vmatpush3.bf16.msra.mxu1 %v1479_v29 }
  0x1f   :  { %1353 = vmatpush3.bf16.msra.mxu0 %v1457_v13  ;;  %1256 = vmatprep.subr.bf16.mxu1 %v1480_v30  ;;  %v1722_v13 = vld [vmem:[%s1879_s6 + $0x10] sm:$0xff]  }
  0x20   :  { %1370 = vmatprep.subr.bf16.mxu0 %v1490_v33 }
  0x22   :  { %1355 = vmatmul.mubr.bf16.vlgmr.msra.gmra.mxu0 %v1459_v18  ;;  %1257 = vmatpush3.bf16.msra.mxu1 %v1481_v31 }
  0x23   :  { %1358 = vmatprep.mubr.bf16.mxu0 %v1460_v19  ;;  %1371 = vmatpush3.bf16.msra.mxu0 %v1490_v33 }
  0x24   :  { %1372 = vmatprep.subr.bf16.mxu0 %v1491_v34  ;;  %1434 = vmatprep.subr.bf16.mxu1 %v1496_v7 }
  0x27   :  { %1373 = vmatpush3.bf16.msra.mxu0 %v1491_v34 }
  0x28   :  { %1374 = vmatprep.subr.bf16.mxu0 %v1492_v35 }
  0x2a   :  { %1359 = vmatmul.mubr.bf16.gmra.mxu0 %v1461_v23 }
  0x2b   :  { %1362 = vmatprep.mubr.bf16.mxu0 %v1462_v24  ;;  %1375 = vmatpush3.bf16.msra.mxu0 %v1492_v35 }
  0x2c   :  { %1376 = vmatprep.subr.bf16.mxu0 %v1493_v3 }
  0x2f   :  { %1377 = vmatpush3.bf16.msra.mxu0 %v1493_v3 }
  0x30   :  { %1378 = vmatprep.subr.bf16.mxu0 %v1494_v4 }
  0x32   :  { %1363 = vmatmul.mubr.bf16.gmra.mxu0 %v1463_v25 }
  0x33   :  { %1366 = vmatprep.mubr.bf16.mxu0 %v1464_v26  ;;  %1379 = vmatpush3.bf16.msra.mxu0 %v1494_v4 }
  0x34   :  { %1380 = vmatprep.subr.bf16.mxu0 %v1495_v5 }
  0x37   :  { %1381 = vmatpush3.bf16.msra.mxu0 %v1495_v5 }
  0x38   :  { %1382 = vmatprep.subr.bf16.mxu0 %v1497_v6 }
  0x3a   :  { %1367 = vmatmul.mubr.bf16.gmra.mxu0 %v1465_v27 }
  0x3b   :  { %1383 = vmatpush3.bf16.msra.mxu0 %v1497_v6 }
  0x3c   :  { %1384 = vmatprep.subr.bf16.mxu0 %v1498_v8 }
  0x3f   :  { %1385 = vmatpush3.bf16.msra.mxu0 %v1498_v8 }
  0x40   :  { %1402 = vmatprep.subr.bf16.mxu0 %v1496_v7 }
  0xe2   :  { %v1356_v36 = vpop.f32.mrf.mxu0 }
  0xe4   :  { %v230_v37 = vpop.f32.mrf.mxu0 }
  0xe6   :  { %v1357_v38 = vpop.f32.mrf.mxu0 }
  0xe7   :  { %v345_v45 = vpack.c.bf16 %v1357_v38, %v1356_v36 }
  0xe8   :  { %v233_v39 = vpop.f32.mrf.mxu0 }
  0xe9   :  { %v344_v41 = vpack.c.bf16 %v233_v39, %v230_v37 }
  0xea   :  { %v1360_v42 = vpop.f32.mrf.mxu0 }
  0xeb   :  { %584 = vmatmul.mubr.bf16.vlgmr.msra.gmra.mxu1 %v344_v41 }
  0xec   :  { %591 = vmatprep.mubr.bf16.mxu1 %v1483_v40  ;;  %v246_v43 = vpop.f32.mrf.mxu0  ;;  %1442 = vmatpush3.bf16.msra.mxu1 %v1496_v7 }
  0xed   :  { %1435 = vmatprep.subr.bf16.mxu1 %v1499_v9 }
  0xee   :  { %v1361_v46 = vpop.f32.mrf.mxu0 }
  0xef   :  { %v347_v53 = vpack.c.bf16 %v1361_v46, %v1360_v42 }
  0xf0   :  { %v249_v47 = vpop.f32.mrf.mxu0  ;;  %1443 = vmatpush3.bf16.msra.mxu1 %v1499_v9 }
  0xf1   :  { %v346_v49 = vpack.c.bf16 %v249_v47, %v246_v43  ;;  %1436 = vmatprep.subr.bf16.mxu1 %v1500_v10 }
  0xf2   :  { %v1364_v50 = vpop.f32.mrf.mxu0 }
  0xf3   :  { %592 = vmatmul.mubr.bf16.gmra.mxu1 %v345_v45 }
  0xf4   :  { %599 = vmatprep.mubr.bf16.mxu1 %v1484_v44  ;;  %v262_v51 = vpop.f32.mrf.mxu0  ;;  %1444 = vmatpush3.bf16.msra.mxu1 %v1500_v10 }
  0xf5   :  { %1437 = vmatprep.subr.bf16.mxu1 %v1501_v11 }
  0xf6   :  { %v1365_v54 = vpop.f32.mrf.mxu0 }
  0xf7   :  { %v349_v61 = vpack.c.bf16 %v1365_v54, %v1364_v50 }
  0xf8   :  { %v265_v55 = vpop.f32.mrf.mxu0  ;;  %1445 = vmatpush3.bf16.msra.mxu1 %v1501_v11 }
  0xf9   :  { %v348_v57 = vpack.c.bf16 %v265_v55, %v262_v51  ;;  %1438 = vmatprep.subr.bf16.mxu1 %v1715_v12 }
  0xfa   :  { %v1368_v58 = vpop.f32.mrf.mxu0 }
  0xfb   :  { %600 = vmatmul.mubr.bf16.gmra.mxu1 %v346_v49 }
  0xfc   :  { %607 = vmatprep.mubr.bf16.mxu1 %v1485_v48  ;;  %v278_v59 = vpop.f32.mrf.mxu0  ;;  %1446 = vmatpush3.bf16.msra.mxu1 %v1715_v12 }
  0xfd   :  { %1439 = vmatprep.subr.bf16.mxu1 %v1722_v13 }
  0xfe   :  { %v1369_v62 = vpop.f32.mrf.mxu0 }
  0xff   :  { %v351_v2 = vpack.c.bf16 %v1369_v62, %v1368_v58 }
 0x100   :  { %v281_v63 = vpop.f32.mrf.mxu0  ;;  %1447 = vmatpush3.bf16.msra.mxu1 %v1722_v13 }
 0x101   :  { %v350_v1 = vpack.c.bf16 %v281_v63, %v278_v59  ;;  %1440 = vmatprep.subr.bf16.mxu1 %v1729_v14 }
 0x103   :  { %608 = vmatmul.mubr.bf16.gmra.mxu1 %v347_v53 }
 0x104   :  { %615 = vmatprep.mubr.bf16.mxu1 %v1486_v52  ;;  %1448 = vmatpush3.bf16.msra.mxu1 %v1729_v14 }
 0x105   :  { %1441 = vmatprep.subr.bf16.mxu1 %v1736_v15 }
 0x108   :  { %1449 = vmatpush3.bf16.msra.mxu1 %v1736_v15 }
 0x10b   :  { %616 = vmatmul.mubr.bf16.gmra.mxu1 %v348_v57 }
 0x10c   :  { %623 = vmatprep.mubr.bf16.mxu1 %v1487_v56 }
 0x113   :  { %624 = vmatmul.mubr.bf16.gmra.mxu1 %v349_v61 }
 0x114   :  { %631 = vmatprep.mubr.bf16.mxu1 %v1488_v60 }
 0x11b   :  { %632 = vmatmul.mubr.bf16.gmra.mxu1 %v350_v1 }
 0x11c   :  { %639 = vmatprep.mubr.bf16.mxu1 %v1489_v0 }
 0x123   :  { %640 = vmatmul.mubr.bf16.gmra.mxu1 %v351_v2 }
 0x1ab   :  { %v1258_v16 = vpop.f32.mrf.mxu1 }
 0x1ad   :  { %v1259_v17 = vpop.f32.mrf.mxu1 }
 0x1ae   :  { %v1260_v19 = vadd.f32 %v1259_v17, %v1258_v16 }
 0x1af   :  { %v1261_v18 = vpop.f32.mrf.mxu1 }
 0x1b0   :  { %v586_v24 = vadd.f32 %v1260_v19, %v1743_v20 }
 0x1b1   :  { %v1262_v21 = vpop.f32.mrf.mxu1 }
 0x1b2   :  { %v1263_v22 = vadd.f32 %v1262_v21, %v1261_v18 }
 0x1b3   :  { %v1264_v23 = vpop.f32.mrf.mxu1 }
 0x1b4   :  { %v589_v25 = vadd.f32 %v1263_v22, %v1743_v20 }
 0x1b5   :  { %v1265_v26 = vpop.f32.mrf.mxu1 }
 0x1b6   :  { %v1747_v27 = vpack.c.bf16 %v589_v25, %v586_v24  ;;  %v1266_v29 = vadd.f32 %v1265_v26, %v1264_v23 }
 0x1b7   :  { %v1267_v28 = vpop.f32.mrf.mxu1 }
 0x1b8   :  { %1386 = vmatprep.mubr.bf16.mxu0 %v1747_v27  ;;  %v594_v33 = vadd.f32 %v1266_v29, %v1743_v20 }
 0x1b9   :  { %v1268_v30 = vpop.f32.mrf.mxu1 }
 0x1ba   :  { %v1269_v31 = vadd.f32 %v1268_v30, %v1267_v28 }
 0x1bb   :  { %v1270_v32 = vpop.f32.mrf.mxu1 }
 0x1bc   :  { %v597_v34 = vadd.f32 %v1269_v31, %v1743_v20 }
 0x1bd   :  { %v1271_v35 = vpop.f32.mrf.mxu1 }
 0x1be   :  { %v1752_v36 = vpack.c.bf16 %v597_v34, %v594_v33  ;;  %v1272_v38 = vadd.f32 %v1271_v35, %v1270_v32 }
 0x1bf   :  { %v1273_v37 = vpop.f32.mrf.mxu1 }
 0x1c0   :  { %1387 = vmatmul.mubr.bf16.vlgmr.msra.gmra.mxu0 %v1752_v36  ;;  %v602_v42 = vadd.f32 %v1272_v38, %v1743_v20 }
 0x1c1   :  { %v1274_v39 = vpop.f32.mrf.mxu1  ;;  %1403 = vmatpush3.bf16.msra.mxu0 %v1496_v7 }
 0x1c2   :  { %v1275_v40 = vadd.f32 %v1274_v39, %v1273_v37  ;;  %1404 = vmatprep.subr.bf16.mxu0 %v1499_v9  ;;  %v1796_v37 = vld [vmem:[%s1882_s7] ss:$0 sm:$0xff] }
 0x1c3   :  { %v1276_v41 = vpop.f32.mrf.mxu1 }
 0x1c4   :  { %v605_v43 = vadd.f32 %v1275_v40, %v1743_v20 }
 0x1c5   :  { %v1277_v44 = vpop.f32.mrf.mxu1  ;;  %1405 = vmatpush3.bf16.msra.mxu0 %v1499_v9 }
 0x1c6   :  { %v1757_v45 = vpack.c.bf16 %v605_v43, %v602_v42  ;;  %1406 = vmatprep.subr.bf16.mxu0 %v1500_v10  ;;  %v1278_v47 = vadd.f32 %v1277_v44, %v1276_v41 }
 0x1c7   :  { %v1279_v46 = vpop.f32.mrf.mxu1 }
 0x1c8   :  { %1390 = vmatprep.mubr.bf16.mxu0 %v1757_v45  ;;  %v610_v51 = vadd.f32 %v1278_v47, %v1743_v20 }
 0x1c9   :  { %v1280_v48 = vpop.f32.mrf.mxu1  ;;  %1407 = vmatpush3.bf16.msra.mxu0 %v1500_v10 }
 0x1ca   :  { %v1281_v49 = vadd.f32 %v1280_v48, %v1279_v46  ;;  %1408 = vmatprep.subr.bf16.mxu0 %v1501_v11 }
 0x1cb   :  { %v1282_v50 = vpop.f32.mrf.mxu1 }
 0x1cc   :  { %v613_v52 = vadd.f32 %v1281_v49, %v1743_v20 }
 0x1cd   :  { %v1283_v53 = vpop.f32.mrf.mxu1  ;;  %1409 = vmatpush3.bf16.msra.mxu0 %v1501_v11 }
 0x1ce   :  { %v651_v54 = vpack.c.bf16 %v613_v52, %v610_v51  ;;  %1410 = vmatprep.subr.bf16.mxu0 %v1715_v12  ;;  %v1284_v56 = vadd.f32 %v1283_v53, %v1282_v50 }
 0x1cf   :  { %v1285_v55 = vpop.f32.mrf.mxu1 }
 0x1d0   :  { %1391 = vmatmul.mubr.bf16.gmra.mxu0 %v651_v54  ;;  %v618_v60 = vadd.f32 %v1284_v56, %v1743_v20 }
 0x1d1   :  { %v1286_v57 = vpop.f32.mrf.mxu1  ;;  %1411 = vmatpush3.bf16.msra.mxu0 %v1715_v12 }
 0x1d2   :  { %v1287_v58 = vadd.f32 %v1286_v57, %v1285_v55  ;;  %1412 = vmatprep.subr.bf16.mxu0 %v1722_v13 }
 0x1d3   :  { %v1288_v59 = vpop.f32.mrf.mxu1 }
 0x1d4   :  { %v621_v61 = vadd.f32 %v1287_v58, %v1743_v20 }
 0x1d5   :  { %v1289_v62 = vpop.f32.mrf.mxu1  ;;  %1413 = vmatpush3.bf16.msra.mxu0 %v1722_v13 }
 0x1d6   :  { %v652_v63 = vpack.c.bf16 %v621_v61, %v618_v60  ;;  %1414 = vmatprep.subr.bf16.mxu0 %v1729_v14  ;;  %v1290_v1 = vadd.f32 %v1289_v62, %v1288_v59 }
 0x1d7   :  { %v1291_v0 = vpop.f32.mrf.mxu1 }
 0x1d8   :  { %1394 = vmatprep.mubr.bf16.mxu0 %v652_v63  ;;  %1426 = vmatprep.mubr.bf16.mxu1 %v652_v63  ;;  %v626_v5 = vadd.f32 %v1290_v1, %v1743_v20 }
 0x1d9   :  { %v1292_v2 = vpop.f32.mrf.mxu1  ;;  %1415 = vmatpush3.bf16.msra.mxu0 %v1729_v14 }
 0x1da   :  { %v1293_v3 = vadd.f32 %v1292_v2, %v1291_v0  ;;  %1416 = vmatprep.subr.bf16.mxu0 %v1736_v15 }
 0x1db   :  { %v1294_v4 = vpop.f32.mrf.mxu1 }
 0x1dc   :  { %v629_v6 = vadd.f32 %v1293_v3, %v1743_v20 }
 0x1dd   :  { %v1295_v7 = vpop.f32.mrf.mxu1  ;;  %1417 = vmatpush3.bf16.msra.mxu0 %v1736_v15 }
 0x1de   :  { %v653_v8 = vpack.c.bf16 %v629_v6, %v626_v5  ;;  %v1296_v10 = vadd.f32 %v1295_v7, %v1294_v4 }
 0x1df   :  { %v1297_v9 = vpop.f32.mrf.mxu1 }
 0x1e0   :  { %1395 = vmatmul.mubr.bf16.gmra.mxu0 %v653_v8  ;;  %1427 = vmatmul.mubr.bf16.vlgmr.msra.gmra.mxu1 %v653_v8  ;;  %v634_v14 = vadd.f32 %v1296_v10, %v1743_v20 }
 0x1e1   :  { %v1298_v11 = vpop.f32.mrf.mxu1 }
 0x1e2   :  { %v1299_v12 = vadd.f32 %v1298_v11, %v1297_v9 }
 0x1e3   :  { %v1300_v13 = vpop.f32.mrf.mxu1 }
 0x1e4   :  { %v637_v16 = vadd.f32 %v1299_v12, %v1743_v20 }
 0x1e5   :  { %v1301_v17 = vpop.f32.mrf.mxu1 }
 0x1e6   :  { %v654_v18 = vpack.c.bf16 %v637_v16, %v634_v14  ;;  %v1302_v21 = vadd.f32 %v1301_v17, %v1300_v13 }
 0x1e7   :  { %v1303_v19 = vpop.f32.mrf.mxu1 }
 0x1e8   :  { %1398 = vmatprep.mubr.bf16.mxu0 %v654_v18  ;;  %1430 = vmatprep.mubr.bf16.mxu1 %v654_v18  ;;  %v642_v23 = vadd.f32 %v1302_v21, %v1743_v20 }
 0x1e9   :  { %v1304_v22 = vpop.f32.mrf.mxu1 }
 0x1ea   :  { %v1305_v15 = vadd.f32 %v1304_v22, %v1303_v19 }
 0x1ec   :  { %v645_v24 = vadd.f32 %v1305_v15, %v1743_v20 }
 0x1ee   :  { %v655_v25 = vpack.c.bf16 %v645_v24, %v642_v23 }
 0x1f0   :  { %1399 = vmatmul.mubr.bf16.gmra.mxu0 %v655_v25  ;;  %1431 = vmatmul.mubr.bf16.gmra.mxu1 %v655_v25 }
 0x1f1   :  { %1418 = vmatprep.mubr.bf16.mxu0 %v1747_v27 }
 0x1f8   :  { %1419 = vmatmul.mubr.bf16.vlgmr.msra.gmra.mxu0 %v1752_v36 }
 0x1f9   :  { %1422 = vmatprep.mubr.bf16.mxu0 %v1757_v45 }
 0x200   :  { %1423 = vmatmul.mubr.bf16.gmra.mxu0 %v651_v54 }
 0x280   :  { %v1388_v26 = vpop.f32.mrf.mxu0 }
 0x282   :  { %v754_v28 = vpop.f32.mrf.mxu0 }
 0x284   :  { %v1389_v29 = vpop.f32.mrf.mxu0 }
 0x285   :  { %v1187_v30 = vpack.c.bf16 %v1389_v29, %v1388_v26 }
 0x286   :  { %v757_v31 = vpop.f32.mrf.mxu0 }
 0x287   :  { %1219 = vst [vmem:[%s1881_s8 + $0x8] sm:$0xff] %v1187_v30   ;;  %v1182_v20 = vpack.c.bf16 %v757_v31, %v754_v28 }
 0x289   :  { %1183 = vst [vmem:[%s1881_s8] sm:$0xff] %v1182_v20  }
 0x290   :  { %v1392_v27 = vpop.f32.mrf.mxu0 }
 0x292   :  { %v770_v32 = vpop.f32.mrf.mxu0 }
 0x294   :  { %v1393_v33 = vpop.f32.mrf.mxu0 }
 0x295   :  { %v1197_v34 = vpack.c.bf16 %v1393_v33, %v1392_v27 }
 0x296   :  { %v773_v35 = vpop.f32.mrf.mxu0 }
 0x297   :  { %1221 = vst [vmem:[%s1881_s8 + $0x18] sm:$0xff] %v1197_v34   ;;  %v1192_v36 = vpack.c.bf16 %v773_v35, %v770_v32 }
 0x299   :  { %1220 = vst [vmem:[%s1881_s8 + $0x10] sm:$0xff] %v1192_v36  }
 0x2a0   :  { %v1396_v38 = vpop.f32.mrf.mxu0  ;;  %v1428_v39 = vpop.f32.mrf.mxu1 }
 0x2a1   :  { %v1043_v40 = vadd.f32 %v1428_v39, %v1796_v37 }
 0x2a2   :  { %v786_v41 = vpop.f32.mrf.mxu0  ;;  %v1034_v42 = vpop.f32.mrf.mxu1 }
 0x2a3   :  { %1075 = vst [vmem:[%s1883_s9 + $0x50] sm:$0xff] %v1043_v40  ;;  %v1035_v43 = vadd.f32 %v1796_v37, %v1034_v42 }
 0x2a4   :  { %v1397_v44 = vpop.f32.mrf.mxu0  ;;  %v1429_v45 = vpop.f32.mrf.mxu1 }
 0x2a5   :  { %1073 = vst [vmem:[%s1883_s9 + $0x40] sm:$0xff] %v1035_v43  ;;  %v1207_v46 = vpack.c.bf16 %v1397_v44, %v1396_v38  ;;  %v1046_v47 = vadd.f32 %v1429_v45, %v1796_v37 }
 0x2a6   :  { %v789_v48 = vpop.f32.mrf.mxu0  ;;  %v1037_v49 = vpop.f32.mrf.mxu1 }
 0x2a7   :  { %1223 = vst [vmem:[%s1881_s8 + $0x28] sm:$0xff] %v1207_v46   ;;  %1076 = vst [vmem:[%s1883_s9 + $0x58] sm:$0xff] %v1046_v47  ;;  %v1202_v50 = vpack.c.bf16 %v789_v48, %v786_v41  ;;  %v1038_v51 = vadd.f32 %v1796_v37, %v1037_v49 }
 0x2a9   :  { %1222 = vst [vmem:[%s1881_s8 + $0x20] sm:$0xff] %v1202_v50   ;;  %1074 = vst [vmem:[%s1883_s9 + $0x48] sm:$0xff] %v1038_v51 }
 0x2b0   :  { %v1400_v52 = vpop.f32.mrf.mxu0  ;;  %v1432_v53 = vpop.f32.mrf.mxu1 }
 0x2b1   :  { %v1059_v54 = vadd.f32 %v1432_v53, %v1796_v37 }
 0x2b2   :  { %v802_v55 = vpop.f32.mrf.mxu0  ;;  %v1050_v56 = vpop.f32.mrf.mxu1 }
 0x2b3   :  { %1079 = vst [vmem:[%s1883_s9 + $0x70] sm:$0xff] %v1059_v54  ;;  %v1051_v57 = vadd.f32 %v1796_v37, %v1050_v56 }
 0x2b4   :  { %v1401_v58 = vpop.f32.mrf.mxu0  ;;  %v1433_v59 = vpop.f32.mrf.mxu1 }
 0x2b5   :  { %1077 = vst [vmem:[%s1883_s9 + $0x60] sm:$0xff] %v1051_v57  ;;  %v1217_v60 = vpack.c.bf16 %v1401_v58, %v1400_v52  ;;  %v1062_v61 = vadd.f32 %v1433_v59, %v1796_v37 }
 0x2b6   :  { %v805_v62 = vpop.f32.mrf.mxu0  ;;  %v1053_v63 = vpop.f32.mrf.mxu1 }
 0x2b7   :  { %1225 = vst [vmem:[%s1881_s8 + $0x38] sm:$0xff] %v1217_v60   ;;  %1080 = vst [vmem:[%s1883_s9 + $0x78] sm:$0xff] %v1062_v61  ;;  %v1212_v0 = vpack.c.bf16 %v805_v62, %v802_v55  ;;  %v1054_v1 = vadd.f32 %v1796_v37, %v1053_v63 }
 0x2b8   :  { %v1420_v2 = vpop.f32.mrf.mxu0 }
 0x2b9   :  { %1224 = vst [vmem:[%s1881_s8 + $0x30] sm:$0xff] %v1212_v0   ;;  %1078 = vst [vmem:[%s1883_s9 + $0x68] sm:$0xff] %v1054_v1  ;;  %v1011_v3 = vadd.f32 %v1420_v2, %v1796_v37 }
 0x2ba   :  { %v1002_v4 = vpop.f32.mrf.mxu0 }
 0x2bb   :  { %1067 = vst [vmem:[%s1883_s9 + $0x10] sm:$0xff] %v1011_v3  ;;  %v1003_v5 = vadd.f32 %v1796_v37, %v1002_v4 }
 0x2bc   :  { %v1421_v6 = vpop.f32.mrf.mxu0 }
 0x2bd   :  { %1065 = vst [vmem:[%s1883_s9] sm:$0xff] %v1003_v5  ;;  %v1014_v7 = vadd.f32 %v1421_v6, %v1796_v37 }
 0x2be   :  { %v1005_v8 = vpop.f32.mrf.mxu0 }
 0x2bf   :  { %1068 = vst [vmem:[%s1883_s9 + $0x18] sm:$0xff] %v1014_v7  ;;  %v1006_v9 = vadd.f32 %v1796_v37, %v1005_v8 }
 0x2c0   :  { %v1424_v10 = vpop.f32.mrf.mxu0 }
 0x2c1   :  { %1066 = vst [vmem:[%s1883_s9 + $0x8] sm:$0xff] %v1006_v9  ;;  %v1027_v11 = vadd.f32 %v1424_v10, %v1796_v37 }
 0x2c2   :  { %v1018_v12 = vpop.f32.mrf.mxu0 }
 0x2c3   :  { %1071 = vst [vmem:[%s1883_s9 + $0x30] sm:$0xff] %v1027_v11  ;;  %v1019_v13 = vadd.f32 %v1796_v37, %v1018_v12 }
 0x2c4   :  { %v1425_v14 = vpop.f32.mrf.mxu0 }
 0x2c5   :  { %1069 = vst [vmem:[%s1883_s9 + $0x20] sm:$0xff] %v1019_v13  ;;  %v1030_v16 = vadd.f32 %v1425_v14, %v1796_v37 }
 0x2c6   :  { %v1021_v17 = vpop.f32.mrf.mxu0 }
 0x2c7   :  { %1072 = vst [vmem:[%s1883_s9 + $0x38] sm:$0xff] %v1030_v16  ;;  %v1022_v18 = vadd.f32 %v1796_v37, %v1021_v17 }
 0x2c9   :  { %1070 = vst [vmem:[%s1883_s9 + $0x28] sm:$0xff] %v1022_v18 }

</bundles_post_ra>
